<compile_context>
chip_gen: v6e
topology: v6e:2x2x1
jax: 0.10.0
libtpu: 0.0.40
codegen_flags: <defaults>
</compile_context>

<pallas_src>
import jax
import jax.numpy as jnp
from jax.experimental import pallas as pl
from jax.experimental.pallas import tpu as pltpu

_NEG_PAD = -1e30  # bias fill for padded output lanes; gumbel noise << 1e30


def _ndt_kernel(u_ref, x_ref, w1_ref, b1_ref, w2_ref, b2_ref, w3_ref, b3_ref,
                l_ref, y_ref):
    # Gumbel noise first: the two EUP log() passes overlap the MXU matmuls.
    g = -jnp.log(-jnp.log(u_ref[...] + 1e-20))

    # logits MLP: three MXU matmuls + VPU relu (weights pre-transposed (in,out))
    x = x_ref[...]
    h1 = jnp.maximum(
        jnp.dot(x, w1_ref[...], preferred_element_type=jnp.float32) + b1_ref[...], 0.0)
    h2 = jnp.maximum(
        jnp.dot(h1, w2_ref[...], preferred_element_type=jnp.float32) + b2_ref[...], 0.0)
    l = jnp.dot(h2, w3_ref[...], preferred_element_type=jnp.float32) + b3_ref[...]
    l_ref[...] = l

    # Hard one-hot directly from h = g + l:
    # argmax(softmax((g+l)/T)) == argmax(g+l) for any T>0, so no softmax needed.
    # First-maximal-index tie-break via iota/min (matches torch.argmax).
    h = g + l
    cols = jax.lax.broadcasted_iota(jnp.int32, h.shape, 1)
    hmax = jnp.max(h, axis=-1, keepdims=True)
    ncols = h.shape[-1]
    first_idx = jnp.min(jnp.where(h == hmax, cols, ncols), axis=-1, keepdims=True)
    y_ref[...] = (cols == first_idx).astype(jnp.int32)


def _round_up(n, m):
    return ((n + m - 1) // m) * m


def discrete_ndt_forward(x, params, noise_key, temperature=1.0, block_b=256):
    """x: (B, x_dim) f32.  Returns (l, y): logits (B, y_dim) f32, one-hot (B, y_dim) i32."""
    if temperature <= 0.0:
        raise ValueError("gsm_temperature must be > 0")
    # The hard one-hot forward is temperature-invariant (argmax only), so
    # `temperature` does not enter the kernel.

    w1, b1, w2, b2, w3, b3 = params
    B, x_dim = x.shape
    hidden = w1.shape[1]
    y_dim = w3.shape[1]

    # Lane-dense outputs: pad the final Linear's output dim up to 128 lanes.
    y_pad = _round_up(y_dim, 128)
    w3p = jnp.zeros((hidden, y_pad), jnp.float32).at[:, :y_dim].set(w3)
    b3p = jnp.full((1, y_pad), _NEG_PAD, jnp.float32).at[:, :y_dim].set(b3)

    # Batch tiling: tb rows per grid step (multiple of 8 sublanes); pad B up.
    tb = min(block_b, _round_up(B, 8))
    b_pad = _round_up(B, tb)
    if b_pad != B:
        x = jnp.pad(x, ((0, b_pad - B), (0, 0)))

    # Uniform noise drawn outside the kernel (deterministic, grid-safe).
    u = jax.random.uniform(noise_key, (b_pad, y_pad), dtype=jnp.float32)

    nb = pl.cdiv(b_pad, tb)
    tile = lambda i: (i, 0)       # batch-tiled arrays
    resident = lambda i: (0, 0)   # weights/biases stay resident across the grid

    flops = 2 * b_pad * (x_dim * hidden + hidden * hidden + hidden * y_pad)
    transcendentals = 2 * b_pad * y_pad
    bytes_accessed = 4 * (b_pad * (x_dim + 3 * y_pad)
                          + x_dim * hidden + hidden * hidden + hidden * y_pad
                          + 2 * hidden + y_pad)

    l_p, y_p = pl.pallas_call(
        _ndt_kernel,
        out_shape=(
            jax.ShapeDtypeStruct((b_pad, y_pad), jnp.float32),
            jax.ShapeDtypeStruct((b_pad, y_pad), jnp.int32),
        ),
        grid=(nb,),
        in_specs=[
            pl.BlockSpec((tb, y_pad), tile),         # u
            pl.BlockSpec((tb, x_dim), tile),         # x
            pl.BlockSpec((x_dim, hidden), resident),  # w1
            pl.BlockSpec((1, hidden), resident),      # b1
            pl.BlockSpec((hidden, hidden), resident),  # w2
            pl.BlockSpec((1, hidden), resident),      # b2
            pl.BlockSpec((hidden, y_pad), resident),  # w3 (padded)
            pl.BlockSpec((1, y_pad), resident),       # b3 (padded)
        ],
        out_specs=(
            pl.BlockSpec((tb, y_pad), tile),
            pl.BlockSpec((tb, y_pad), tile),
        ),
        compiler_params=pltpu.CompilerParams(
            dimension_semantics=("parallel",)),
        cost_estimate=pl.CostEstimate(
            flops=flops, transcendentals=transcendentals,
            bytes_accessed=bytes_accessed),
    )(u, x, w1, b1, w2, b2, w3p, b3p)

    return l_p[:B, :y_dim], y_p[:B, :y_dim]


def init_params(key, x_dim, hidden, y_dim):
    """Deterministic init matching nn.Linear default (U[-1/sqrt(fan_in), +]).

    Weights are stored already transposed to (in, out)."""
    ks = jax.random.split(key, 6)

    def linear(kw, kb, fan_in, fan_out):
        bound = 1.0 / (fan_in ** 0.5)
        w = jax.random.uniform(kw, (fan_in, fan_out), jnp.float32, -bound, bound)
        b = jax.random.uniform(kb, (1, fan_out), jnp.float32, -bound, bound)
        return w, b

    w1, b1 = linear(ks[0], ks[1], x_dim, hidden)
    w2, b2 = linear(ks[2], ks[3], hidden, hidden)
    w3, b3 = linear(ks[4], ks[5], hidden, y_dim)
    return (w1, b1, w2, b2, w3, b3)


if __name__ == "__main__":
    # config: x_dim=16, ndt_hidden_dim=32, y_dim=16, gsm_temperature=1.0
    B, X_DIM, HIDDEN, Y_DIM = 8, 16, 32, 16
    TEMPERATURE = 1.0

    key = jax.random.PRNGKey(0)
    kx, kp, kn = jax.random.split(key, 3)
    x = jax.random.normal(kx, (B, X_DIM), dtype=jnp.float32)
    params = init_params(kp, X_DIM, HIDDEN, Y_DIM)

    l, y = discrete_ndt_forward(x, params, kn, temperature=TEMPERATURE)
    jax.block_until_ready((l, y))

    assert l.shape == (B, Y_DIM) and l.dtype == jnp.float32
    assert y.shape == (B, Y_DIM) and y.dtype == jnp.int32
    # each row of y must be exactly one-hot
    assert bool(jnp.all(jnp.sum(y, axis=-1) == 1))

    # logits cross-check against a plain-JAX reference
    w1, b1, w2, b2, w3, b3 = params
    h1 = jnp.maximum(x @ w1 + b1, 0.0)
    h2 = jnp.maximum(h1 @ w2 + b2, 0.0)
    l_ref = h2 @ w3 + b3
    assert bool(jnp.allclose(l, l_ref, atol=1e-5, rtol=1e-5))

    print("KERNEL_OK")
</pallas_src>

<mosaic_0001>
module attributes {stable_mosaic.version = 11 : i64} {
  func.func @_ndt_kernel(%arg0: i32, %arg1: memref<8x128xf32, #tpu.memory_space<vmem>>, %arg2: memref<8x16xf32, #tpu.memory_space<vmem>>, %arg3: memref<16x32xf32, #tpu.memory_space<vmem>>, %arg4: memref<1x32xf32, #tpu.memory_space<vmem>>, %arg5: memref<32x32xf32, #tpu.memory_space<vmem>>, %arg6: memref<1x32xf32, #tpu.memory_space<vmem>>, %arg7: memref<32x128xf32, #tpu.memory_space<vmem>>, %arg8: memref<1x128xf32, #tpu.memory_space<vmem>>, %arg9: memref<8x128xf32, #tpu.memory_space<vmem>>, %arg10: memref<8x128xi32, #tpu.memory_space<vmem>>) attributes {dimension_semantics = [#tpu.dimension_semantics<parallel>], iteration_bounds = array<i64: 1>, scalar_prefetch = 0 : i64, scratch_operands = 0 : i64, tpu.core_type = #tpu.core_type<tc>, window_params = [{transform_indices = @transform_0, window_bounds = array<i64: 8, 128>}, {transform_indices = @transform_1, window_bounds = array<i64: 8, 16>}, {pipeline_mode = #tpu.pipeline_mode<synchronous>, transform_indices = @transform_2, window_bounds = array<i64: 16, 32>}, {pipeline_mode = #tpu.pipeline_mode<synchronous>, transform_indices = @transform_3, window_bounds = array<i64: 1, 32>}, {pipeline_mode = #tpu.pipeline_mode<synchronous>, transform_indices = @transform_4, window_bounds = array<i64: 32, 32>}, {pipeline_mode = #tpu.pipeline_mode<synchronous>, transform_indices = @transform_5, window_bounds = array<i64: 1, 32>}, {pipeline_mode = #tpu.pipeline_mode<synchronous>, transform_indices = @transform_6, window_bounds = array<i64: 32, 128>}, {pipeline_mode = #tpu.pipeline_mode<synchronous>, transform_indices = @transform_7, window_bounds = array<i64: 1, 128>}, {transform_indices = @transform_8, window_bounds = array<i64: 8, 128>}, {transform_indices = @transform_9, window_bounds = array<i64: 8, 128>}]} {
    %c0 = arith.constant 0 : index
    %c0_0 = arith.constant 0 : index
    %0 = vector.load %arg1[%c0, %c0_0] : memref<8x128xf32, #tpu.memory_space<vmem>>, vector<8x128xf32>
    %cst = arith.constant 9.99999968E-21 : f32
    %1 = vector.broadcast %cst : f32 to vector<8x128xf32>
    %2 = arith.addf %0, %1 : vector<8x128xf32>
    %3 = math.log %2 : vector<8x128xf32>
    %cst_1 = arith.constant 0.000000e+00 : f32
    %4 = vector.broadcast %cst_1 : f32 to vector<8x128xf32>
    %5 = arith.subf %4, %3 : vector<8x128xf32>
    %6 = math.log %5 : vector<8x128xf32>
    %cst_2 = arith.constant 0.000000e+00 : f32
    %7 = vector.broadcast %cst_2 : f32 to vector<8x128xf32>
    %8 = arith.subf %7, %6 : vector<8x128xf32>
    %c0_3 = arith.constant 0 : index
    %c0_4 = arith.constant 0 : index
    %9 = vector.load %arg2[%c0_3, %c0_4] : memref<8x16xf32, #tpu.memory_space<vmem>>, vector<8x16xf32>
    %c0_5 = arith.constant 0 : index
    %c0_6 = arith.constant 0 : index
    %10 = vector.load %arg3[%c0_5, %c0_6] : memref<16x32xf32, #tpu.memory_space<vmem>>, vector<16x32xf32>
    %cst_7 = arith.constant dense<0.000000e+00> : vector<8x32xf32>
    %11 = tpu.matmul %9, %10, %cst_7 {dimension_numbers = #tpu.dot_dimension_numbers<[1], [0], [0], [1], [0, 0, 1, 1], [], []>} : vector<8x16xf32>, vector<16x32xf32>, vector<8x32xf32> -> vector<8x32xf32>
    %c0_8 = arith.constant 0 : index
    %c0_9 = arith.constant 0 : index
    %12 = vector.load %arg4[%c0_8, %c0_9] : memref<1x32xf32, #tpu.memory_space<vmem>>, vector<1x32xf32>
    %13 = vector.broadcast %12 : vector<1x32xf32> to vector<8x32xf32>
    %14 = arith.addf %11, %13 : vector<8x32xf32>
    %cst_10 = arith.constant 0.000000e+00 : f32
    %15 = vector.broadcast %cst_10 : f32 to vector<8x32xf32>
    %16 = arith.maximumf %14, %15 : vector<8x32xf32>
    %c0_11 = arith.constant 0 : index
    %c0_12 = arith.constant 0 : index
    %17 = vector.load %arg5[%c0_11, %c0_12] : memref<32x32xf32, #tpu.memory_space<vmem>>, vector<32x32xf32>
    %cst_13 = arith.constant dense<0.000000e+00> : vector<8x32xf32>
    %18 = tpu.matmul %16, %17, %cst_13 {dimension_numbers = #tpu.dot_dimension_numbers<[1], [0], [0], [1], [0, 0, 1, 1], [], []>} : vector<8x32xf32>, vector<32x32xf32>, vector<8x32xf32> -> vector<8x32xf32>
    %c0_14 = arith.constant 0 : index
    %c0_15 = arith.constant 0 : index
    %19 = vector.load %arg6[%c0_14, %c0_15] : memref<1x32xf32, #tpu.memory_space<vmem>>, vector<1x32xf32>
    %20 = vector.broadcast %19 : vector<1x32xf32> to vector<8x32xf32>
    %21 = arith.addf %18, %20 : vector<8x32xf32>
    %cst_16 = arith.constant 0.000000e+00 : f32
    %22 = vector.broadcast %cst_16 : f32 to vector<8x32xf32>
    %23 = arith.maximumf %21, %22 : vector<8x32xf32>
    %c0_17 = arith.constant 0 : index
    %c0_18 = arith.constant 0 : index
    %24 = vector.load %arg7[%c0_17, %c0_18] : memref<32x128xf32, #tpu.memory_space<vmem>>, vector<32x128xf32>
    %cst_19 = arith.constant dense<0.000000e+00> : vector<8x128xf32>
    %25 = tpu.matmul %23, %24, %cst_19 {dimension_numbers = #tpu.dot_dimension_numbers<[1], [0], [0], [1], [0, 0, 1, 1], [], []>} : vector<8x32xf32>, vector<32x128xf32>, vector<8x128xf32> -> vector<8x128xf32>
    %c0_20 = arith.constant 0 : index
    %c0_21 = arith.constant 0 : index
    %26 = vector.load %arg8[%c0_20, %c0_21] : memref<1x128xf32, #tpu.memory_space<vmem>>, vector<1x128xf32>
    %27 = vector.broadcast %26 : vector<1x128xf32> to vector<8x128xf32>
    %28 = arith.addf %25, %27 : vector<8x128xf32>
    %c0_22 = arith.constant 0 : index
    %c0_23 = arith.constant 0 : index
    %29 = vector.load %arg9[%c0_22, %c0_23] : memref<8x128xf32, #tpu.memory_space<vmem>>, vector<8x128xf32>
    tpu.vector_store %arg9[%c0_22, %c0_23], %28 {strides = array<i32>} : memref<8x128xf32, #tpu.memory_space<vmem>>, vector<8x128xf32>,
    %30 = arith.addf %8, %28 : vector<8x128xf32>
    %31 = tpu.iota {dimensions = array<i32: 1>} : vector<8x128xi32>
    %cst_24 = arith.constant dense<0xFF800000> : vector<8xf32>
    %32 = vector.multi_reduction <maximumf>, %30, %cst_24 [1] : vector<8x128xf32> to vector<8xf32>
    %33 = vector.shape_cast %32 : vector<8xf32> to vector<8x1xf32>
    %34 = vector.broadcast %33 : vector<8x1xf32> to vector<8x128xf32>
    %35 = arith.cmpf oeq, %30, %34 : vector<8x128xf32>
    %c128_i32 = arith.constant 128 : i32
    %36 = vector.broadcast %c128_i32 : i32 to vector<8x128xi32>
    %37 = arith.select %35, %31, %36 : vector<8x128xi1>, vector<8x128xi32>
    %cst_25 = arith.constant dense<2147483647> : vector<8xi32>
    %38 = vector.multi_reduction <minsi>, %37, %cst_25 [1] : vector<8x128xi32> to vector<8xi32>
    %39 = vector.shape_cast %38 : vector<8xi32> to vector<8x1xi32>
    %40 = vector.broadcast %39 : vector<8x1xi32> to vector<8x128xi32>
    %41 = arith.cmpi eq, %31, %40 : vector<8x128xi32>
    %42 = arith.extui %41 : vector<8x128xi1> to vector<8x128xi32>
    %c0_26 = arith.constant 0 : index
    %c0_27 = arith.constant 0 : index
    %43 = vector.load %arg10[%c0_26, %c0_27] : memref<8x128xi32, #tpu.memory_space<vmem>>, vector<8x128xi32>
    tpu.vector_store %arg10[%c0_26, %c0_27], %42 {strides = array<i32>} : memref<8x128xi32, #tpu.memory_space<vmem>>, vector<8x128xi32>,
    return
  }
  func.func @transform_0(%arg0: i32) -> (i32, i32) {
    %c0_i32 = arith.constant 0 : i32
    %c0_i32_0 = arith.constant 0 : i32
    return %arg0, %c0_i32 : i32, i32
  }
  func.func @transform_1(%arg0: i32) -> (i32, i32) {
    %c0_i32 = arith.constant 0 : i32
    %c0_i32_0 = arith.constant 0 : i32
    return %arg0, %c0_i32 : i32, i32
  }
  func.func @transform_2(%arg0: i32) -> (i32, i32) {
    %c0_i32 = arith.constant 0 : i32
    %c0_i32_0 = arith.constant 0 : i32
    %c0_i32_1 = arith.constant 0 : i32
    return %c0_i32, %c0_i32_0 : i32, i32
  }
  func.func @transform_3(%arg0: i32) -> (i32, i32) {
    %c0_i32 = arith.constant 0 : i32
    %c0_i32_0 = arith.constant 0 : i32
    %c0_i32_1 = arith.constant 0 : i32
    return %c0_i32, %c0_i32_0 : i32, i32
  }
  func.func @transform_4(%arg0: i32) -> (i32, i32) {
    %c0_i32 = arith.constant 0 : i32
    %c0_i32_0 = arith.constant 0 : i32
    %c0_i32_1 = arith.constant 0 : i32
    return %c0_i32, %c0_i32_0 : i32, i32
  }
  func.func @transform_5(%arg0: i32) -> (i32, i32) {
    %c0_i32 = arith.constant 0 : i32
    %c0_i32_0 = arith.constant 0 : i32
    %c0_i32_1 = arith.constant 0 : i32
    return %c0_i32, %c0_i32_0 : i32, i32
  }
  func.func @transform_6(%arg0: i32) -> (i32, i32) {
    %c0_i32 = arith.constant 0 : i32
    %c0_i32_0 = arith.constant 0 : i32
    %c0_i32_1 = arith.constant 0 : i32
    return %c0_i32, %c0_i32_0 : i32, i32
  }
  func.func @transform_7(%arg0: i32) -> (i32, i32) {
    %c0_i32 = arith.constant 0 : i32
    %c0_i32_0 = arith.constant 0 : i32
    %c0_i32_1 = arith.constant 0 : i32
    return %c0_i32, %c0_i32_0 : i32, i32
  }
  func.func @transform_8(%arg0: i32) -> (i32, i32) {
    %c0_i32 = arith.constant 0 : i32
    %c0_i32_0 = arith.constant 0 : i32
    return %arg0, %c0_i32 : i32, i32
  }
  func.func @transform_9(%arg0: i32) -> (i32, i32) {
    %c0_i32 = arith.constant 0 : i32
    %c0_i32_0 = arith.constant 0 : i32
    return %arg0, %c0_i32 : i32, i32
  }
}

</mosaic_0001>

<bundles_post_ra>
// kernel: tpu_custom_call.1
= control target key start
LH: loop header
LB: loop body
LE: loop exit
PB: predicated region body
PF: predicated region fallthrough
CT: control target
= control target key end

     0   :  { %15 = vsyncpa [#allocation3], 0  ;;  %s736_s0 = inlined_call_operand.hbm [shape: f32[8,128], index: 0, kind: input, shape index: {}]   ;;  %s737_s1 = inlined_call_operand.hbm [shape: f32[8,16], index: 1, kind: input, shape index: {}]   ;;  %s738_s2 = inlined_call_operand.hbm [shape: f32[16,32], index: 2, kind: input, shape index: {}]   ;;  %s739_s3 = inlined_call_operand.vmem [shape: f32[1,32], index: 3, kind: input, shape index: {}]   ;;  %s740_s4 = inlined_call_operand.hbm [shape: f32[32,32], index: 4, kind: input, shape index: {}]   ;;  %s741_s5 = inlined_call_operand.vmem [shape: f32[1,32], index: 5, kind: input, shape index: {}]   ;;  %s742_s6 = inlined_call_operand.hbm [shape: f32[32,128], index: 6, kind: input, shape index: {}]   ;;  %s743_s7 = inlined_call_operand.vmem [shape: f32[1,128], index: 7, kind: input, shape index: {}]   ;;  %s744_s8 = inlined_call_operand.hbm [shape: f32[8,128], index: 8, kind: output, shape index: {0}]   ;;  %s745_s9 = inlined_call_operand.hbm [shape: s32[8,128], index: 9, kind: output, shape index: {1}]  }
   0x1   :  { %16 = vsyncpa [#allocation6], 0 }
   0x2   :  { %17 = vsyncpa [#allocation9], 0 }
   0x3   :  { %18 = vsyncpa [#allocation4], 0 }
   0x4   :  { %19 = vsyncpa [#allocation13], 0  ;;  %s630_s30 = smov [#allocation5]  }
   0x5   :  { %s36_s10 = sshll.u32 %s630_s30, 4  ;;  %s37_s10 = int_to_ptr.vmem [resolvable:$true] %s36_s10 }
   0x6   :  { %s488_s11 = scalar_lea.vmem %s37_s10, 128  ;;  %p493_p1 = scmp.lt.s32.totalorder %s37_s10, %s37_s10 }
   0x7   :  { %p489_p0 = scmp.ne.s32.totalorder %s37_s10, %s488_s11  ;;  %p494_p2 = scmp.lt.s32.totalorder %s488_s11, %s488_s11 }
   0x9   :  { %p495_p3 = por %p494_p2, %p493_p1 }
   0xb   :  { %p496_p4 = pnand %p495_p3, %p489_p0 }
   0xd   :  { %499 = shalt.err (!%p496_p4)
}
   0xe   :  { %39 = dma.hbm_to_vmem [thread:$0]  %s737_s1, 128, %s37_s10, [#allocation6]  }
   0xf   :  { %s631_s14 = smov [#allocation8]   ;;  %s632_s16 = smov [#allocation2]  }
  0x10   :  { %s59_s15 = sshll.u32 %s631_s14, 4  ;;  %s26_s17 = sshll.u32 %s632_s16, 4  ;;  %s60_s15 = int_to_ptr.vmem [resolvable:$true] %s59_s15  ;;  %s27_s17 = int_to_ptr.vmem [resolvable:$true] %s26_s17 }
  0x11   :  { %s508_s18 = scalar_lea.vmem %s60_s15, 512  ;;  %p513_p6 = scmp.lt.s32.totalorder %s60_s15, %s60_s15 }
  0x12   :  { %p509_p5 = scmp.ne.s32.totalorder %s60_s15, %s508_s18  ;;  %p514_p7 = scmp.lt.s32.totalorder %s508_s18, %s508_s18 }
  0x14   :  { %p515_p8 = por %p514_p7, %p513_p6 }
  0x16   :  { %p516_p9 = pnand %p515_p8, %p509_p5 }
  0x18   :  { %519 = shalt.err (!%p516_p9)
}
  0x19   :  { %s633_s19 = smov 128   ;;  %s634_s20 = smov 8  }
  0x1a   :  { %65 = dma.hbm_to_vmem [thread:$0]  %s740_s4, 512, %s60_s15, [#allocation9], %s633_s19, %s633_s19, %s634_s20  }
  0x1b   :  { %s528_s1 = scalar_lea.vmem %s27_s17, 128  ;;  %p533_p11 = scmp.lt.s32.totalorder %s27_s17, %s27_s17 }
  0x1c   :  { %p529_p10 = scmp.ne.s32.totalorder %s27_s17, %s528_s1  ;;  %p534_p12 = scmp.lt.s32.totalorder %s528_s1, %s528_s1 }
  0x1e   :  { %p535_p13 = por %p534_p12, %p533_p11 }
  0x20   :  { %p536_p0 = pnand %p535_p13, %p529_p10 }
  0x22   :  { %539 = shalt.err (!%p536_p0)
}
  0x23   :  { %29 = dma.hbm_to_vmem [thread:$0]  %s736_s0, 128, %s27_s17, [#allocation3]  }
  0x24   :  { %s635_s25 = smov [#allocation7]   ;;  %s636_s27 = smov [#allocation10]  }
  0x25   :  { %s45_s26 = sshll.u32 %s635_s25, 4  ;;  %s73_s28 = sshll.u32 %s636_s27, 4  ;;  %s46_s26 = int_to_ptr.vmem [resolvable:$true] %s45_s26  ;;  %s74_s28 = int_to_ptr.vmem [resolvable:$true] %s73_s28 }
  0x26   :  { %s548_s29 = scalar_lea.vmem %s46_s26, 256  ;;  %p553_p2 = scmp.lt.s32.totalorder %s46_s26, %s46_s26 }
  0x27   :  { %p549_p1 = scmp.ne.s32.totalorder %s46_s26, %s548_s29  ;;  %p554_p3 = scmp.lt.s32.totalorder %s548_s29, %s548_s29 }
  0x29   :  { %p555_p4 = por %p554_p3, %p553_p2 }
  0x2b   :  { %p556_p5 = pnand %p555_p4, %p549_p1 }
  0x2d   :  { %559 = shalt.err (!%p556_p5)
}
  0x2e   :  { %51 = dma.hbm_to_vmem [thread:$0]  %s738_s2, 256, %s46_s26, [#allocation6], %s633_s19, %s633_s19, %s634_s20  }
  0x2f   :  { %s568_s0 = scalar_lea.vmem %s74_s28, 512  ;;  %p573_p7 = scmp.lt.s32.totalorder %s74_s28, %s74_s28 }
  0x30   :  { %p569_p6 = scmp.ne.s32.totalorder %s74_s28, %s568_s0  ;;  %p574_p8 = scmp.lt.s32.totalorder %s568_s0, %s568_s0 }
  0x32   :  { %p575_p9 = por %p574_p8, %p573_p7 }
  0x34   :  { %p576_p10 = pnand %p575_p9, %p569_p6 }
  0x36   :  { %579 = shalt.err (!%p576_p10)
}
  0x37   :  { %79 = dma.hbm_to_vmem [thread:$0]  %s742_s6, 512, %s74_s28, [#allocation9], %s633_s19, %s633_s19, %s634_s20  }
  0x38   :  { %620 = dma.done.wait [#allocation3], 128  }
  0x39   :  { %621 = vsyncadd [#allocation3], 4294967168 }
  0x3a   :  { %622 = dma.done.wait [#allocation6], 384  }
  0x3b   :  { %623 = vsyncadd [#allocation6], 4294966912 }
  0x3c   :  { %624 = dma.done.wait [#allocation9], 1024  }
  0x3d   :  { %625 = vsyncadd [#allocation9], 4294966272  ;;  %v637_v0 = vmov 0.0   ;;  %vm638_vm0 = vmmov 0   ;;  %v107_v1 = vld [vmem:[#allocation7 + $0x8] sm:$0xff]  ;;  %v106_v2 = vld [vmem:[#allocation7] sm:$0xff]  ;;  %v362_v35 = vlaneseq }
  0x3e   :  { %435 = vmatprep.subr.mxu0 %v637_v0  ;;  %439 = vmatprep.mubr.msk.f32.mxu0 %vm638_vm0, %v637_v0  ;;  %v105_v3 = vld [vmem:[#allocation5] sm:$0xff]  ;;  %vm115_vm1 = vcmask 130048   ;;  %v193_v4 = vld [vmem:[#allocation8 + $0x18] sm:$0xff]  ;;  %v192_v5 = vld [vmem:[#allocation8 + $0x10] sm:$0xff]  ;;  %vm201_vm2 = vcmask 261120  }
  0x3f   :  { %442 = vmatprep.subr.mxu1 %v637_v0  ;;  %450 = vmatprep.mubr.msk.f32.mxu1 %vm638_vm0, %v637_v0  ;;  %v191_v6 = vld [vmem:[#allocation8 + $0x8] sm:$0xff]  ;;  %v190_v7 = vld [vmem:[#allocation8] sm:$0xff]  ;;  %v279_v8 = vld [vmem:[#allocation10 + $0x18] sm:$0xff]  ;;  %v363_v36 = vand.u32 127, %v362_v35 }
  0x40   :  { %436 = vmatpush3.msra.mxu0 %v107_v1  ;;  %443 = vmatpush3.msra.mxu1 %v193_v4  ;;  %v416_v9 = vld [vmem:[%s739_s3] ss:$0 sm:$0xff]  ;;  %v278_v14 = vld [vmem:[#allocation10 + $0x10] sm:$0xff]  ;;  %v277_v15 = vld [vmem:[#allocation10 + $0x8] sm:$0xff] }
  0x41   :  { %437 = vmatprep.subr.mxu0 %v637_v0  ;;  %444 = vmatprep.subr.mxu1 %v637_v0  ;;  %v276_v16 = vld [vmem:[#allocation10] sm:$0xff] }
  0x42   :  { %438 = vmatpush3.msra.mxu0 %v106_v2  ;;  %445 = vmatpush3.msra.mxu1 %v192_v5  ;;  %v418_v17 = vld [vmem:[%s741_s5] ss:$0 sm:$0xff]  ;;  %s639_s5 = smov [#allocation11]  }
  0x43   :  { %440 = vmatmul.mubr.msk.f32.vlgmr.msra.gmra.mxu0 %vm115_vm1, %v105_v3  ;;  %453 = vmatprep.subr.mxu0 %v637_v0  ;;  %v97_v22 = vld [vmem:[#allocation2] sm:$0xff] }
  0x44   :  { %461 = vmatprep.mubr.msk.f32.mxu0 %vm638_vm0, %v637_v0  ;;  %446 = vmatprep.subr.mxu1 %v637_v0  ;;  %v98_v23 = vadd.f32 1e-20, %v97_v22  ;;  %v420_v29 = vld [vmem:[%s743_s7] ss:$0 sm:$0xff]  ;;  %s391_s7 = sshll.u32 %s639_s5, 4  ;;  %s392_s7 = int_to_ptr.vmem [resolvable:$true] %s391_s7 }
  0x45   :  { %447 = vmatpush3.msra.mxu1 %v191_v6  ;;  %454 = vmatpush3.msra.mxu0 %v279_v8  ;;  %s580_s15 = scalar_lea.vmem %s392_s7, 128  ;;  %p585_p12 = scmp.lt.s32.totalorder %s392_s7, %s392_s7 }
  0x46   :  { %448 = vmatprep.subr.mxu1 %v637_v0  ;;  %455 = vmatprep.subr.mxu0 %v637_v0  ;;  %476 = vlog2.f32 %v98_v23  ;;  %p581_p11 = scmp.ne.s32.totalorder %s392_s7, %s580_s15  ;;  %p586_p13 = scmp.lt.s32.totalorder %s580_s15, %s580_s15 }
  0x47   :  { %449 = vmatpush3.msra.mxu1 %v190_v7  ;;  %456 = vmatpush3.msra.mxu0 %v278_v14 }
  0x48   :  { %457 = vmatprep.subr.mxu0 %v637_v0  ;;  %p587_p0 = por %p586_p13, %p585_p12 }
  0x49   :  { %458 = vmatpush3.msra.mxu0 %v277_v15 }
  0x4a   :  { %459 = vmatprep.subr.mxu0 %v637_v0  ;;  %p588_p1 = pnand %p587_p0, %p581_p11 }
  0x4b   :  { %460 = vmatpush3.msra.mxu0 %v276_v16 }
  0x53   :  { %v477_v24 = vpop.eup %476 }
  0x54   :  { %v100_v25 = vmul.f32 0.6931472, %v477_v24 }
  0x56   :  { %v101_v26 = vsub.f32 0.0, %v100_v25 }
  0x58   :  { %478 = vlog2.f32 %v101_v26 }
  0x65   :  { %v479_v27 = vpop.eup %478 }
  0x66   :  { %v103_v28 = vmul.f32 0.6931472, %v479_v27 }
  0x68   :  { %v104_v30 = vsub.f32 0.0, %v103_v28 }
 0x103   :  { %v185_v10 = vpop.f32.mrf.mxu0 }
 0x104   :  { %v186_v11 = vadd.f32 %v416_v9, %v185_v10 }
 0x105   :  { %v441_v12 = vpop.f32.mrf.mxu0 }
 0x106   :  { %v189_v13 = vmax.f32 %v186_v11, 0.0 }
 0x108   :  { %451 = vmatmul.mubr.msk.f32.vlgmr.msra.gmra.mxu1 %vm201_vm2, %v189_v13 }
 0x1c8   :  { %v271_v18 = vpop.f32.mrf.mxu1 }
 0x1c9   :  { %v272_v19 = vadd.f32 %v418_v17, %v271_v18 }
 0x1ca   :  { %v452_v20 = vpop.f32.mrf.mxu1 }
 0x1cb   :  { %v275_v21 = vmax.f32 %v272_v19, 0.0 }
 0x1cd   :  { %462 = vmatmul.mubr.msk.f32.vlgmr.msra.gmra.mxu0 %vm201_vm2, %v275_v21 }
 0x28d   :  { %v356_v31 = vpop.f32.mrf.mxu0 }
 0x28e   :  { %v357_v32 = vadd.f32 %v420_v29, %v356_v31 }
 0x28f   :  { %v463_v33 = vpop.f32.mrf.mxu0 }
 0x290   :  { %360 = vst [vmem:[#allocation11] sm:$0xff] %v357_v32  ;;  %v361_v34 = vadd.f32 %v357_v32, %v104_v30 }
 0x292   :  { %364 = vmax.xlane.f32.xlu0 %v361_v34 }
 0x31b   :  { %v365_v37 = vpop.xlane.xlu0 %364 }
 0x31c   :  { %vm366_vm3 = vcmp.eq.f32.partialorder %v361_v34, %v365_v37 }
 0x31d   :  { %v367_v38 = vsel %vm366_vm3, %v363_v36, 128 }
 0x31e   :  { %v369_v39 = vshra.s32 %v367_v38, 16  ;;  %v368_v41 = vand.u32 65535, %v367_v38 }
 0x320   :  { %v371_v40 = vcvt.s32.f32 %v369_v39  ;;  %v370_v43 = vcvt.s32.f32 %v368_v41 }
 0x322   :  { %372 = vmin.xlane.f32.xlu0 %v371_v40 }
 0x3ab   :  { %v373_v42 = vpop.xlane.xlu0 %372 }
 0x3ac   :  { %vm374_vm4 = vcmp.eq.f32.partialorder %v371_v40, %v373_v42 }
 0x3ad   :  { %v375_v44 = vsel %vm374_vm4, %v370_v43, inf }
 0x3ae   :  { %376 = vmin.xlane.f32.xlu1 %v375_v44 }
 0x3af   :  { %591 = shalt.err (!%p588_p1)
}
 0x3b0   :  { %394 = dma.vmem_to_hbm [thread:$0]  %s392_s7, 128, %s744_s8, [#allocation4]   ;;  %v379_v45 = vcvt.f32.s32 %v373_v42  ;;  %v641_v50 = vmov 0  }
 0x3b1   :  { %s640_s18 = smov [#allocation12]  }
 0x3b2   :  { %v380_v47 = vshll.u32 %v379_v45, 16  ;;  %s401_s19 = sshll.u32 %s640_s18, 4  ;;  %s402_s19 = int_to_ptr.vmem [resolvable:$true] %s401_s19 }
 0x3b3   :  { %s600_s20 = scalar_lea.vmem %s402_s19, 128  ;;  %p605_p3 = scmp.lt.s32.totalorder %s402_s19, %s402_s19 }
 0x3b4   :  { %p601_p2 = scmp.ne.s32.totalorder %s402_s19, %s600_s20  ;;  %p606_p4 = scmp.lt.s32.totalorder %s600_s20, %s600_s20 }
 0x3b6   :  { %p607_p5 = por %p606_p4, %p605_p3 }
 0x3b8   :  { %p608_p6 = pnand %p607_p5, %p601_p2 }
 0x437   :  { %v377_v46 = vpop.xlane.xlu1 %376 }
 0x438   :  { %v378_v48 = vcvt.f32.s32 %v377_v46 }
 0x43a   :  { %v381_v49 = vadd.s32 %v380_v47, %v378_v48 }
 0x43c   :  { %vm382_vm5 = vcmp.eq.s32.totalorder %v363_v36, %v381_v49 }
 0x43d   :  { %v383_v51 = vsel %vm382_vm5, 1, %v641_v50 }
 0x43e   :  { %384 = vst [vmem:[#allocation12] sm:$0xff] %v383_v51 }
 0x43f   :  { %611 = shalt.err (!%p608_p6)
}
 0x440   :  { %404 = dma.vmem_to_hbm [thread:$0]  %s402_s19, 128, %s745_s9, [#allocation13]  }
 0x441   :  { %626 = dma.done.wait [#allocation4], 128  }
 0x442   :  { %627 = vsyncadd [#allocation4], 4294967168 }
 0x443   :  { %628 = dma.done.wait [#allocation13], 128  }
 0x444   :  { %629 = vsyncadd [#allocation13], 4294967168 }
 0x445   :  { %411 = vsyncpa [#allocation3], 1 }
 0x446   :  { %412 = vsyncpa [#allocation6], 1 }
 0x447   :  { %413 = vsyncpa [#allocation9], 1 }
 0x448   :  { %414 = vsyncpa [#allocation4], 1 }
 0x449   :  { %415 = vsyncpa [#allocation13], 1 }

</bundles_post_ra>
